<compile_context>
chip_gen: v7x
topology: tpu7x:2x2x1
jax: 0.10.0
libtpu: 0.0.40
codegen_flags: <defaults>
</compile_context>

<pallas_src>
import functools

import jax
import jax.numpy as jnp
from jax.experimental import pallas as pl
from jax.experimental.pallas import tpu as pltpu


def _round_up(x, m):
    return (x + m - 1) // m * m


# Probe once whether this JAX version supports single-buffered BlockSpecs.
try:
    pl.BlockSpec((8, 128), lambda i: (0, 0), pipeline_mode=pl.Buffered(1))
    _HAS_SINGLE_BUFFER = True
except Exception:  # older JAX: fall back to default double buffering
    _HAS_SINGLE_BUFFER = False


def _spec(shape, index_map, *, buffers=None):
    if buffers is not None and _HAS_SINGLE_BUFFER:
        return pl.BlockSpec(shape, index_map, pipeline_mode=pl.Buffered(buffers))
    return pl.BlockSpec(shape, index_map)


@functools.lru_cache(maxsize=1)
def _tpu_config():
    """(usable VMEM capacity bytes, MXU tile width) for the current backend."""
    vmem_cap = 128 * 1024 * 1024
    try:
        vmem_cap = int(pltpu.get_tpu_info().vmem_capacity_bytes)
    except Exception:
        pass
    try:
        kind = jax.devices()[0].device_kind.lower()
    except Exception:
        kind = ""
    mxu = 256 if (("v6" in kind) or ("v7" in kind) or ("7x" in kind)) else 128
    if ("v7" in kind) or ("7x" in kind):
        vmem_cap = min(vmem_cap, 64 * 1024 * 1024)  # 64 MiB per TensorCore on v7x
    return vmem_cap, mxu


def _pad_dim(d, mxu):
    # 256-align feature dims on v6e/v7x (256-wide MXU) when the dim is already
    # >128; 128-alignment is optimal on v5e (128x128 MXU) and for tiny dims.
    if mxu >= 256 and d > 128:
        return _round_up(d, 256)
    return _round_up(d, 128)


def _pick_tile(total, target, align):
    """Largest multiple of `align` that divides `total` and is <= target."""
    best = align
    t = align
    while t <= total:
        if total % t == 0 and t <= target:
            best = t
        t += align
    return best


# --------------------------- kernels ---------------------------------------

def _augment_fused_kernel(x_ref, w1_ref, b1_ref, w2_ref, b2_ref, w3_ref,
                          b3_ref, o_ref):
    # x: (TB, E_p) f32 (cast to bf16 in-kernel -> no extra HBM pad/cast pass);
    # weights bf16 (VMEM-resident); biases f32; out f32; f32 MXU accumulation.
    x = x_ref[...].astype(jnp.bfloat16)
    h1 = jnp.dot(x, w1_ref[...], preferred_element_type=jnp.float32)
    h1 = jnp.tanh(h1 + b1_ref[...])
    h2 = jnp.dot(h1.astype(jnp.bfloat16), w2_ref[...],
                 preferred_element_type=jnp.float32)
    h2 = jnp.tanh(h2 + b2_ref[...])
    y = jnp.dot(h2.astype(jnp.bfloat16), w3_ref[...],
                preferred_element_type=jnp.float32) + b3_ref[...]
    o_ref[...] = y.astype(o_ref.dtype)


def _linear_kernel(x_ref, w_ref, b_ref, o_ref, *, activate):
    x = x_ref[...]
    if x.dtype != jnp.bfloat16:
        x = x.astype(jnp.bfloat16)
    y = jnp.dot(x, w_ref[...], preferred_element_type=jnp.float32) + b_ref[...]
    if activate:
        y = jnp.tanh(y)
    o_ref[...] = y.astype(o_ref.dtype)


def _linear_call(x_p, w_p, b_p, *, activate, out_dtype, tb, vmem_cap):
    """Fallback per-layer linear: weight tiled over its output (N) dimension."""
    B_p, K_p = x_p.shape
    N_p = w_p.shape[1]
    tn = _pick_tile(N_p, 512, 128)
    need = (2 * tb * K_p * x_p.dtype.itemsize            # x tiles (2-buffered)
            + 2 * K_p * tn * 2                           # weight tiles (bf16)
            + 2 * tn * 4                                 # bias tiles
            + 2 * tb * tn * jnp.dtype(out_dtype).itemsize  # out tiles
            + tb * tn * 4)                               # f32 accumulator
    vmem_limit = int(min(vmem_cap * 4 // 5,
                         max(32 * 1024 * 1024, need * 3 // 2)))
    return pl.pallas_call(
        functools.partial(_linear_kernel, activate=activate),
        out_shape=jax.ShapeDtypeStruct((B_p, N_p), out_dtype),
        grid=(B_p // tb, N_p // tn),
        in_specs=[
            pl.BlockSpec((tb, K_p), lambda i, j: (i, 0)),
            pl.BlockSpec((K_p, tn), lambda i, j: (0, j)),
            pl.BlockSpec((1, tn), lambda i, j: (0, j)),
        ],
        out_specs=pl.BlockSpec((tb, tn), lambda i, j: (i, j)),
        compiler_params=pltpu.CompilerParams(
            dimension_semantics=("parallel", "parallel"),
            vmem_limit_bytes=vmem_limit),
    )(x_p, w_p, b_p)


# --------------------------- forward ----------------------------------------

@functools.partial(jax.jit, static_argnames=("dims", "block_b"))
def _augment_apply(x, params, dims, block_b):
    E, H, E_p, H_p = dims
    B = x.shape[0]
    vmem_cap, _ = _tpu_config()

    # ---- batch tile --------------------------------------------------------
    sub = 16  # bf16 sublane packing for the in-kernel cast / MXU M granularity
    TB = block_b if B >= block_b else _round_up(B, sub)
    # v7x megacore: make sure both TensorCores get work when batch is large.
    if B >= 2 * 128 and _round_up(B, TB) // TB < 2:
        TB = _round_up((B + 1) // 2, 128)

    # ---- fused-path VMEM accounting (weights single-buffered, resident) ----
    wbuf = 1 if _HAS_SINGLE_BUFFER else 2
    def fused_need(tb):
        return (wbuf * 2 * (E_p * H_p + H_p * H_p + H_p * E_p)  # bf16 weights
                + wbuf * 4 * (2 * H_p + E_p)                    # f32 biases
                + 2 * tb * E_p * 4                              # x tiles (f32, 2-buf)
                + 2 * tb * E_p * 4                              # out tiles (f32, 2-buf)
                + tb * E_p * 2                                  # in-kernel bf16 x
                + 2 * tb * H_p * (4 + 2))                       # h1/h2 f32 + bf16 casts

    fused_budget = vmem_cap * 3 // 4
    # If tight, shrink the batch tile before giving up weight residency.
    while fused_need(TB) > fused_budget and TB > 128:
        TB = max(128, TB // 2)

    B_p = _round_up(B, TB)
    if B_p == B and E_p == E:
        x_p = x                                   # already tile-aligned: no pad copy
    else:
        x_p = jnp.pad(x, ((0, B_p - B), (0, E_p - E)))

    vmem_cap_limit = vmem_cap * 4 // 5            # ~51 MiB on v7x, ~102 MiB v5e/v6e

    if fused_need(TB) <= fused_budget:
        vmem_limit = int(min(vmem_cap_limit,
                             max(32 * 1024 * 1024, fused_need(TB) * 3 // 2)))
        res = lambda shape: _spec(shape, lambda i: (0, 0), buffers=1)
        out_p = pl.pallas_call(
            _augment_fused_kernel,
            out_shape=jax.ShapeDtypeStruct((B_p, E_p), jnp.float32),
            grid=(B_p // TB,),
            in_specs=[
                pl.BlockSpec((TB, E_p), lambda i: (i, 0)),   # x tile (streams)
                res((E_p, H_p)), res((1, H_p)),              # w1, b1 (resident)
                res((H_p, H_p)), res((1, H_p)),              # w2, b2
                res((H_p, E_p)), res((1, E_p)),              # w3, b3
            ],
            out_specs=pl.BlockSpec((TB, E_p), lambda i: (i, 0)),
            compiler_params=pltpu.CompilerParams(
                dimension_semantics=("parallel",),           # v7x: shard batch tiles
                vmem_limit_bytes=vmem_limit),
        )(x_p, *params)
    else:
        # Fallback when all three bf16 weights can't stay VMEM-resident (large
        # emb_dim, notably v7x's 64 MiB/TC): per-layer kernels, each weight
        # streamed in N tiles while its batch tile of activations is reused.
        w1p, b1p, w2p, b2p, w3p, b3p = params
        h = _linear_call(x_p, w1p, b1p, activate=True, out_dtype=jnp.bfloat16,
                         tb=TB, vmem_cap=vmem_cap)
        h = _linear_call(h, w2p, b2p, activate=True, out_dtype=jnp.bfloat16,
                         tb=TB, vmem_cap=vmem_cap)
        out_p = _linear_call(h, w3p, b3p, activate=False, out_dtype=jnp.float32,
                             tb=TB, vmem_cap=vmem_cap)

    if B_p == B and E_p == E:
        return out_p
    return out_p[:B, :E]


class AugmentPallas:
    """Pallas-TPU forward of the PyTorch `Augment` module.

    Weights/biases are padded to lane-dense shapes and cast (bf16 weights, f32
    biases) ONCE at construction, so the per-call path only streams x / out.
    Zero padding keeps the valid region exact: padded input cols hit zero
    weight rows, padded hidden units are tanh(0)=0 feeding zero rows of the
    next layer, and padded output cols / batch rows are sliced off.
    """

    def __init__(self, w1, b1, w2, b2, w3, b3, *, block_b=256):
        E, H = w1.shape
        assert H == 2 * E
        assert w2.shape == (H, H) and w3.shape == (H, E)
        _, mxu = _tpu_config()
        E_p, H_p = _pad_dim(E, mxu), _pad_dim(H, mxu)

        def padw(w, r, c):
            return jnp.pad(w, ((0, r - w.shape[0]),
                               (0, c - w.shape[1]))).astype(jnp.bfloat16)

        def padb(b, c):
            b = jnp.asarray(b, jnp.float32).reshape(1, -1)
            return jnp.pad(b, ((0, 0), (0, c - b.shape[1])))

        self.params = (padw(w1, E_p, H_p), padb(b1, H_p),
                       padw(w2, H_p, H_p), padb(b2, H_p),
                       padw(w3, H_p, E_p), padb(b3, E_p))
        self.dims = (E, H, E_p, H_p)
        self.block_b = block_b

    def __call__(self, x):
        return _augment_apply(x, self.params, self.dims, self.block_b)


def augment_forward(x, w1, b1, w2, b2, w3, b3, *, block_b=256):
    """One-shot convenience wrapper (pads/casts weights on every call — prefer
    constructing `AugmentPallas` once and reusing it)."""
    return AugmentPallas(w1, b1, w2, b2, w3, b3, block_b=block_b)(x)


# --------------------------- test harness -----------------------------------

def init_params(key, emb_dim):
    """Deterministic init mimicking nn.Linear's U(-1/sqrt(fan_in), 1/sqrt(fan_in))."""
    E, H = emb_dim, emb_dim * 2
    ks = jax.random.split(key, 6)

    def lin(kw, kb, fan_in, fan_out):
        bound = 1.0 / jnp.sqrt(fan_in)
        w = jax.random.uniform(kw, (fan_in, fan_out), jnp.float32, -bound, bound)
        b = jax.random.uniform(kb, (1, fan_out), jnp.float32, -bound, bound)
        return w, b

    w1, b1 = lin(ks[0], ks[1], E, H)
    w2, b2 = lin(ks[2], ks[3], H, H)
    w3, b3 = lin(ks[4], ks[5], H, E)
    return w1, b1, w2, b2, w3, b3


def reference_forward(x, w1, b1, w2, b2, w3, b3):
    h1 = jnp.tanh(x @ w1 + b1)
    h2 = jnp.tanh(h1 @ w2 + b2)
    return h2 @ w3 + b3


if __name__ == "__main__":
    key = jax.random.PRNGKey(0)
    k_x, k_p = jax.random.split(key)

    batch, emb_dim = 8, 32
    x = jax.random.normal(k_x, (batch, emb_dim), jnp.float32)
    params = init_params(k_p, emb_dim)

    model = AugmentPallas(*params)            # pad/cast weights once
    out = jax.block_until_ready(model(x))

    ref = reference_forward(x, *params)
    assert out.shape == (batch, emb_dim)
    # bf16 MXU operands (f32 accumulation) -> looser tolerance vs f32 reference.
    assert jnp.allclose(out, ref, atol=3e-2, rtol=3e-2), "mismatch vs reference"

    print("KERNEL_OK")
</pallas_src>

<mosaic_0001>
module attributes {stable_mosaic.version = 11 : i64} {
  func.func @_augment_fused_kernel(%arg0: i32, %arg1: memref<16x128xf32, #tpu.memory_space<vmem>>, %arg2: memref<128x128xbf16, #tpu.memory_space<vmem>>, %arg3: memref<1x128xf32, #tpu.memory_space<vmem>>, %arg4: memref<128x128xbf16, #tpu.memory_space<vmem>>, %arg5: memref<1x128xf32, #tpu.memory_space<vmem>>, %arg6: memref<128x128xbf16, #tpu.memory_space<vmem>>, %arg7: memref<1x128xf32, #tpu.memory_space<vmem>>, %arg8: memref<16x128xf32, #tpu.memory_space<vmem>>) attributes {dimension_semantics = [#tpu.dimension_semantics<parallel>], iteration_bounds = array<i64: 1>, scalar_prefetch = 0 : i64, scratch_operands = 0 : i64, tpu.core_type = #tpu.core_type<tc>, window_params = [{transform_indices = @transform_0, window_bounds = array<i64: 16, 128>}, {pipeline_mode = #tpu.pipeline_mode<synchronous>, transform_indices = @transform_1, window_bounds = array<i64: 128, 128>}, {pipeline_mode = #tpu.pipeline_mode<synchronous>, transform_indices = @transform_2, window_bounds = array<i64: 1, 128>}, {pipeline_mode = #tpu.pipeline_mode<synchronous>, transform_indices = @transform_3, window_bounds = array<i64: 128, 128>}, {pipeline_mode = #tpu.pipeline_mode<synchronous>, transform_indices = @transform_4, window_bounds = array<i64: 1, 128>}, {pipeline_mode = #tpu.pipeline_mode<synchronous>, transform_indices = @transform_5, window_bounds = array<i64: 128, 128>}, {pipeline_mode = #tpu.pipeline_mode<synchronous>, transform_indices = @transform_6, window_bounds = array<i64: 1, 128>}, {transform_indices = @transform_7, window_bounds = array<i64: 16, 128>}]} {
    %c0 = arith.constant 0 : index
    %c0_0 = arith.constant 0 : index
    %0 = vector.load %arg1[%c0, %c0_0] : memref<16x128xf32, #tpu.memory_space<vmem>>, vector<16x128xf32>
    %1 = arith.truncf %0 : vector<16x128xf32> to vector<16x128xbf16>
    %c0_1 = arith.constant 0 : index
    %c0_2 = arith.constant 0 : index
    %2 = vector.load %arg2[%c0_1, %c0_2] : memref<128x128xbf16, #tpu.memory_space<vmem>>, vector<128x128xbf16>
    %cst = arith.constant dense<0.000000e+00> : vector<16x128xf32>
    %3 = tpu.matmul %1, %2, %cst {dimension_numbers = #tpu.dot_dimension_numbers<[1], [0], [0], [1], [0, 0, 1, 1], [], []>} : vector<16x128xbf16>, vector<128x128xbf16>, vector<16x128xf32> -> vector<16x128xf32>
    %c0_3 = arith.constant 0 : index
    %c0_4 = arith.constant 0 : index
    %4 = vector.load %arg3[%c0_3, %c0_4] : memref<1x128xf32, #tpu.memory_space<vmem>>, vector<1x128xf32>
    %5 = vector.broadcast %4 : vector<1x128xf32> to vector<16x128xf32>
    %6 = arith.addf %3, %5 : vector<16x128xf32>
    %7 = math.tanh %6 : vector<16x128xf32>
    %8 = arith.truncf %7 : vector<16x128xf32> to vector<16x128xbf16>
    %c0_5 = arith.constant 0 : index
    %c0_6 = arith.constant 0 : index
    %9 = vector.load %arg4[%c0_5, %c0_6] : memref<128x128xbf16, #tpu.memory_space<vmem>>, vector<128x128xbf16>
    %cst_7 = arith.constant dense<0.000000e+00> : vector<16x128xf32>
    %10 = tpu.matmul %8, %9, %cst_7 {dimension_numbers = #tpu.dot_dimension_numbers<[1], [0], [0], [1], [0, 0, 1, 1], [], []>} : vector<16x128xbf16>, vector<128x128xbf16>, vector<16x128xf32> -> vector<16x128xf32>
    %c0_8 = arith.constant 0 : index
    %c0_9 = arith.constant 0 : index
    %11 = vector.load %arg5[%c0_8, %c0_9] : memref<1x128xf32, #tpu.memory_space<vmem>>, vector<1x128xf32>
    %12 = vector.broadcast %11 : vector<1x128xf32> to vector<16x128xf32>
    %13 = arith.addf %10, %12 : vector<16x128xf32>
    %14 = math.tanh %13 : vector<16x128xf32>
    %15 = arith.truncf %14 : vector<16x128xf32> to vector<16x128xbf16>
    %c0_10 = arith.constant 0 : index
    %c0_11 = arith.constant 0 : index
    %16 = vector.load %arg6[%c0_10, %c0_11] : memref<128x128xbf16, #tpu.memory_space<vmem>>, vector<128x128xbf16>
    %cst_12 = arith.constant dense<0.000000e+00> : vector<16x128xf32>
    %17 = tpu.matmul %15, %16, %cst_12 {dimension_numbers = #tpu.dot_dimension_numbers<[1], [0], [0], [1], [0, 0, 1, 1], [], []>} : vector<16x128xbf16>, vector<128x128xbf16>, vector<16x128xf32> -> vector<16x128xf32>
    %c0_13 = arith.constant 0 : index
    %c0_14 = arith.constant 0 : index
    %18 = vector.load %arg7[%c0_13, %c0_14] : memref<1x128xf32, #tpu.memory_space<vmem>>, vector<1x128xf32>
    %19 = vector.broadcast %18 : vector<1x128xf32> to vector<16x128xf32>
    %20 = arith.addf %17, %19 : vector<16x128xf32>
    %c0_15 = arith.constant 0 : index
    %c0_16 = arith.constant 0 : index
    %21 = vector.load %arg8[%c0_15, %c0_16] : memref<16x128xf32, #tpu.memory_space<vmem>>, vector<16x128xf32>
    tpu.vector_store %arg8[%c0_15, %c0_16], %20 {strides = array<i32>} : memref<16x128xf32, #tpu.memory_space<vmem>>, vector<16x128xf32>,
    return
  }
  func.func @transform_0(%arg0: i32) -> (i32, i32) {
    %c0_i32 = arith.constant 0 : i32
    %c0_i32_0 = arith.constant 0 : i32
    return %arg0, %c0_i32 : i32, i32
  }
  func.func @transform_1(%arg0: i32) -> (i32, i32) {
    %c0_i32 = arith.constant 0 : i32
    %c0_i32_0 = arith.constant 0 : i32
    %c0_i32_1 = arith.constant 0 : i32
    return %c0_i32, %c0_i32_0 : i32, i32
  }
  func.func @transform_2(%arg0: i32) -> (i32, i32) {
    %c0_i32 = arith.constant 0 : i32
    %c0_i32_0 = arith.constant 0 : i32
    %c0_i32_1 = arith.constant 0 : i32
    return %c0_i32, %c0_i32_0 : i32, i32
  }
  func.func @transform_3(%arg0: i32) -> (i32, i32) {
    %c0_i32 = arith.constant 0 : i32
    %c0_i32_0 = arith.constant 0 : i32
    %c0_i32_1 = arith.constant 0 : i32
    return %c0_i32, %c0_i32_0 : i32, i32
  }
  func.func @transform_4(%arg0: i32) -> (i32, i32) {
    %c0_i32 = arith.constant 0 : i32
    %c0_i32_0 = arith.constant 0 : i32
    %c0_i32_1 = arith.constant 0 : i32
    return %c0_i32, %c0_i32_0 : i32, i32
  }
  func.func @transform_5(%arg0: i32) -> (i32, i32) {
    %c0_i32 = arith.constant 0 : i32
    %c0_i32_0 = arith.constant 0 : i32
    %c0_i32_1 = arith.constant 0 : i32
    return %c0_i32, %c0_i32_0 : i32, i32
  }
  func.func @transform_6(%arg0: i32) -> (i32, i32) {
    %c0_i32 = arith.constant 0 : i32
    %c0_i32_0 = arith.constant 0 : i32
    %c0_i32_1 = arith.constant 0 : i32
    return %c0_i32, %c0_i32_0 : i32, i32
  }
  func.func @transform_7(%arg0: i32) -> (i32, i32) {
    %c0_i32 = arith.constant 0 : i32
    %c0_i32_0 = arith.constant 0 : i32
    return %arg0, %c0_i32 : i32, i32
  }
}

</mosaic_0001>

<bundles_post_ra>
// kernel: _augment_apply.1
= control target key start
LH: loop header
LB: loop body
LE: loop exit
PB: predicated region body
PF: predicated region fallthrough
CT: control target
= control target key end

     0   :  { %12 = vsyncpa [#allocation3], 0  ;;  %s794_s0 = inlined_call_operand.vmem [shape: f32[16,128], index: 0, kind: input, shape index: {}]   ;;  %s795_s1 = inlined_call_operand.hbm [shape: bf16[128,128], index: 1, kind: input, shape index: {}]   ;;  %s796_s2 = inlined_call_operand.vmem [shape: f32[1,128], index: 2, kind: input, shape index: {}]   ;;  %s797_s3 = inlined_call_operand.hbm [shape: bf16[128,128], index: 3, kind: input, shape index: {}]   ;;  %s798_s4 = inlined_call_operand.vmem [shape: f32[1,128], index: 4, kind: input, shape index: {}]   ;;  %s799_s5 = inlined_call_operand.hbm [shape: bf16[128,128], index: 5, kind: input, shape index: {}]   ;;  %s800_s6 = inlined_call_operand.vmem [shape: f32[1,128], index: 6, kind: input, shape index: {}]   ;;  %s801_s7 = inlined_call_operand.vmem [shape: f32[16,128], index: 7, kind: output, shape index: {}]  }
   0x1   :  { %13 = vsyncpa [#allocation5], 0  ;;  %s644_s24 = smov [#allocation4]   ;;  %s645_s26 = smov [#allocation2]  }
   0x2   :  { %s35_s25 = sshll.u32 %s644_s24, 4  ;;  %s21_s27 = sshll.u32 %s645_s26, 4  ;;  %s36_s25 = int_to_ptr.vmem [resolvable:$true] %s35_s25  ;;  %s691_s27 = int_to_ptr.vmem [resolvable:$true] %s21_s27 }
   0x3   :  { %s574_s30 = scalar_lea.hbm %s797_s3, 1024 }
   0x4   :  { %p575_p0 = scmp.ne.s32.totalorder %s797_s3, %s574_s30  ;;  %p578_p1 = scmp.lt.u32.totalorder %s574_s30, %s797_s3 }
   0x6   :  { %p580_p2 = pnand %p578_p1, %p575_p0 }
   0x8   :  { %583 = shalt.err (!%p580_p2)
}
   0x9   :  { %s584_s12 = scalar_lea.vmem %s36_s25, 1024  ;;  %p589_p4 = scmp.lt.s32.totalorder %s36_s25, %s36_s25 }
   0xa   :  { %p585_p3 = scmp.ne.s32.totalorder %s36_s25, %s584_s12  ;;  %p590_p5 = scmp.lt.s32.totalorder %s584_s12, %s584_s12 }
   0xc   :  { %p591_p6 = por %p590_p5, %p589_p4 }
   0xe   :  { %p592_p7 = pnand %p591_p6, %p585_p3 }
  0x10   :  { %595 = shalt.err (!%p592_p7)
}
  0x11   :  { %s646_s13 = smov 64   ;;  %s647_s14 = smov 4  }
  0x12   :  { %41 = dma.hbm_to_vmem [thread:$0]  %s797_s3, 1024, %s36_s25, [#allocation5], %s646_s13, %s646_s13, %s647_s14  }
  0x13   :  { %s596_s19 = scalar_lea.hbm %s795_s1, 1024 }
  0x14   :  { %p597_p8 = scmp.ne.s32.totalorder %s795_s1, %s596_s19  ;;  %p600_p9 = scmp.lt.u32.totalorder %s596_s19, %s795_s1 }
  0x16   :  { %p602_p10 = pnand %p600_p9, %p597_p8 }
  0x18   :  { %605 = shalt.err (!%p602_p10)
}
  0x19   :  { %s606_s24 = scalar_lea.vmem %s691_s27, 1024  ;;  %p611_p12 = scmp.lt.s32.totalorder %s691_s27, %s691_s27 }
  0x1a   :  { %p607_p11 = scmp.ne.s32.totalorder %s691_s27, %s606_s24  ;;  %p612_p13 = scmp.lt.s32.totalorder %s606_s24, %s606_s24 }
  0x1c   :  { %p613_p0 = por %p612_p13, %p611_p12 }
  0x1e   :  { %p614_p1 = pnand %p613_p0, %p607_p11 }
  0x20   :  { %617 = shalt.err (!%p614_p1)
}
  0x21   :  { %27 = dma.hbm_to_vmem [thread:$0]  %s795_s1, 1024, %s691_s27, [#allocation3], %s646_s13, %s646_s13, %s647_s14  }
  0x22   :  { %s648_s26 = smov [#allocation6]   ;;  %s618_s8 = scalar_lea.hbm %s799_s5, 1024 }
  0x23   :  { %s49_s28 = sshll.u32 %s648_s26, 4  ;;  %p619_p2 = scmp.ne.s32.totalorder %s799_s5, %s618_s8  ;;  %s50_s28 = int_to_ptr.vmem [resolvable:$true] %s49_s28 }
  0x24   :  { %p622_p3 = scmp.lt.u32.totalorder %s618_s8, %s799_s5 }
  0x26   :  { %p624_p4 = pnand %p622_p3, %p619_p2 }
  0x28   :  { %627 = shalt.err (!%p624_p4)
}
  0x29   :  { %s628_s15 = scalar_lea.vmem %s50_s28, 1024  ;;  %p633_p6 = scmp.lt.s32.totalorder %s50_s28, %s50_s28 }
  0x2a   :  { %p629_p5 = scmp.ne.s32.totalorder %s50_s28, %s628_s15  ;;  %p634_p7 = scmp.lt.s32.totalorder %s628_s15, %s628_s15 }
  0x2c   :  { %p635_p8 = por %p634_p7, %p633_p6 }
  0x2e   :  { %p636_p9 = pnand %p635_p8, %p629_p5 }
  0x30   :  { %639 = shalt.err (!%p636_p9)
}
  0x31   :  { %55 = dma.hbm_to_vmem [thread:$0]  %s799_s5, 1024, %s50_s28, [#allocation5], %s646_s13, %s646_s13, %s647_s14  }
  0x32   :  { %640 = dma.done.wait [#allocation3], 1024  }
  0x33   :  { %641 = vsyncadd [#allocation3], 4294966272 }
  0x34   :  { %642 = dma.done.wait [#allocation5], 2048  }
  0x35   :  { %643 = vsyncadd [#allocation5], 4294965248  ;;  %v649_v0 = vmov 0.0   ;;  %vm650_vm0 = vmmov 0   ;;  %v542_v1 = vld [vmem:[#allocation2] sm:$0xff]   ;;  %v543_v2 = vld [vmem:[#allocation2 + $0x8] sm:$0xff]  }
  0x36   :  { %475 = vmatprep.subr.bf16.mxu0 %v649_v0  ;;  %491 = vmatprep.mubr.msk.bf16.mxu0 %vm650_vm0, %v649_v0  ;;  %v544_v3 = vld [vmem:[#allocation2 + $0x10] sm:$0xff]   ;;  %v550_v4 = vld [vmem:[#allocation4] sm:$0xff]   ;;  %v545_v5 = vld [vmem:[#allocation2 + $0x18] sm:$0xff]  }
  0x37   :  { %495 = vmatprep.subr.bf16.mxu1 %v649_v0  ;;  %511 = vmatprep.mubr.msk.bf16.mxu1 %vm650_vm0, %v649_v0  ;;  %v551_v6 = vld [vmem:[#allocation4 + $0x8] sm:$0xff]   ;;  %v546_v7 = vld [vmem:[#allocation2 + $0x20] sm:$0xff]   ;;  %v552_v8 = vld [vmem:[#allocation4 + $0x10] sm:$0xff]  }
  0x38   :  { %476 = vmatpush3.bf16.msra.mxu0 %v542_v1  ;;  %496 = vmatpush3.bf16.msra.mxu1 %v550_v4  ;;  %v547_v9 = vld [vmem:[#allocation2 + $0x28] sm:$0xff]   ;;  %v553_v10 = vld [vmem:[#allocation4 + $0x18] sm:$0xff]   ;;  %v548_v11 = vld [vmem:[#allocation2 + $0x30] sm:$0xff]  }
  0x39   :  { %477 = vmatprep.subr.bf16.mxu0 %v649_v0  ;;  %497 = vmatprep.subr.bf16.mxu1 %v649_v0  ;;  %v549_v12 = vld [vmem:[#allocation2 + $0x38] sm:$0xff]   ;;  %v68_v13 = vld [vmem:[%s794_s0] sm:$0xff]  ;;  %v69_v14 = vld [vmem:[%s794_s0 + $0x8] sm:$0xff] }
  0x3a   :  { %v70_v15 = vpack.c.bf16 %v69_v14, %v68_v13  ;;  %v554_v16 = vld [vmem:[#allocation4 + $0x20] sm:$0xff]   ;;  %v555_v17 = vld [vmem:[#allocation4 + $0x28] sm:$0xff]   ;;  %v556_v18 = vld [vmem:[#allocation4 + $0x30] sm:$0xff]  }
  0x3b   :  { %v557_v19 = vld [vmem:[#allocation4 + $0x38] sm:$0xff]   ;;  %v558_v20 = vld [vmem:[#allocation6] sm:$0xff]   ;;  %v559_v21 = vld [vmem:[#allocation6 + $0x8] sm:$0xff]  }
  0x3c   :  { %478 = vmatpush3.bf16.msra.mxu0 %v543_v2  ;;  %498 = vmatpush3.bf16.msra.mxu1 %v551_v6  ;;  %v560_v22 = vld [vmem:[#allocation6 + $0x10] sm:$0xff]   ;;  %v561_v23 = vld [vmem:[#allocation6 + $0x18] sm:$0xff]   ;;  %v421_v24 = vld [vmem:[%s796_s2] ss:$0 sm:$0xff] }
  0x3d   :  { %479 = vmatprep.subr.bf16.mxu0 %v649_v0  ;;  %499 = vmatprep.subr.bf16.mxu1 %v649_v0  ;;  %v562_v34 = vld [vmem:[#allocation6 + $0x20] sm:$0xff]   ;;  %v563_v35 = vld [vmem:[#allocation6 + $0x28] sm:$0xff]   ;;  %v564_v36 = vld [vmem:[#allocation6 + $0x30] sm:$0xff]  }
  0x3e   :  { %v565_v37 = vld [vmem:[#allocation6 + $0x38] sm:$0xff]   ;;  %v430_v38 = vld [vmem:[%s798_s4] ss:$0 sm:$0xff] }
  0x3f   :  { %v439_v48 = vld [vmem:[%s800_s6] ss:$0 sm:$0xff] }
  0x40   :  { %480 = vmatpush3.bf16.msra.mxu0 %v544_v3  ;;  %500 = vmatpush3.bf16.msra.mxu1 %v552_v8 }
  0x41   :  { %481 = vmatprep.subr.bf16.mxu0 %v649_v0  ;;  %501 = vmatprep.subr.bf16.mxu1 %v649_v0 }
  0x44   :  { %482 = vmatpush3.bf16.msra.mxu0 %v545_v5  ;;  %502 = vmatpush3.bf16.msra.mxu1 %v553_v10 }
  0x45   :  { %483 = vmatprep.subr.bf16.mxu0 %v649_v0  ;;  %503 = vmatprep.subr.bf16.mxu1 %v649_v0 }
  0x48   :  { %484 = vmatpush3.bf16.msra.mxu0 %v546_v7  ;;  %504 = vmatpush3.bf16.msra.mxu1 %v554_v16 }
  0x49   :  { %485 = vmatprep.subr.bf16.mxu0 %v649_v0  ;;  %505 = vmatprep.subr.bf16.mxu1 %v649_v0 }
  0x4c   :  { %486 = vmatpush3.bf16.msra.mxu0 %v547_v9  ;;  %506 = vmatpush3.bf16.msra.mxu1 %v555_v17 }
  0x4d   :  { %487 = vmatprep.subr.bf16.mxu0 %v649_v0  ;;  %507 = vmatprep.subr.bf16.mxu1 %v649_v0 }
  0x50   :  { %488 = vmatpush3.bf16.msra.mxu0 %v548_v11  ;;  %508 = vmatpush3.bf16.msra.mxu1 %v556_v18 }
  0x51   :  { %489 = vmatprep.subr.bf16.mxu0 %v649_v0  ;;  %509 = vmatprep.subr.bf16.mxu1 %v649_v0 }
  0x54   :  { %490 = vmatpush3.bf16.msra.mxu0 %v549_v12  ;;  %510 = vmatpush3.bf16.msra.mxu1 %v557_v19 }
  0x55   :  { %515 = vmatprep.subr.bf16.mxu0 %v649_v0 }
  0x57   :  { %492 = vmatmul.mubr.bf16.vlgmr.msra.gmra.mrb[0].mxu0 %v70_v15 }
  0x58   :  { %531 = vmatprep.mubr.msk.bf16.mxu0 %vm650_vm0, %v649_v0  ;;  %516 = vmatpush3.bf16.msra.mxu0 %v558_v20 }
  0x59   :  { %517 = vmatprep.subr.bf16.mxu0 %v649_v0 }
  0x5c   :  { %518 = vmatpush3.bf16.msra.mxu0 %v559_v21 }
  0x5d   :  { %519 = vmatprep.subr.bf16.mxu0 %v649_v0 }
  0x60   :  { %520 = vmatpush3.bf16.msra.mxu0 %v560_v22 }
  0x61   :  { %521 = vmatprep.subr.bf16.mxu0 %v649_v0 }
  0x64   :  { %522 = vmatpush3.bf16.msra.mxu0 %v561_v23 }
  0x65   :  { %523 = vmatprep.subr.bf16.mxu0 %v649_v0 }
  0x68   :  { %524 = vmatpush3.bf16.msra.mxu0 %v562_v34 }
  0x69   :  { %525 = vmatprep.subr.bf16.mxu0 %v649_v0 }
  0x6c   :  { %526 = vmatpush3.bf16.msra.mxu0 %v563_v35 }
  0x6d   :  { %527 = vmatprep.subr.bf16.mxu0 %v649_v0 }
  0x70   :  { %528 = vmatpush3.bf16.msra.mxu0 %v564_v36 }
  0x71   :  { %529 = vmatprep.subr.bf16.mxu0 %v649_v0 }
  0x74   :  { %530 = vmatpush3.bf16.msra.mxu0 %v565_v37 }
 0x12a   :  { %v176_v25 = vpop.f32.mrb[0].mxu0 }
 0x12b   :  { %v177_v26 = vadd.f32 %v421_v24, %v176_v25  ;;  %v493_v27 = vpop.f32.mrb[1].mxu0 }
 0x12c   :  { %v179_v28 = vpop.f32.mrb[2].mxu0 }
 0x12d   :  { %v180_v29 = vadd.f32 %v421_v24, %v179_v28  ;;  %v494_v30 = vpop.f32.mrb[3].mxu0  ;;  %566 = vtanh.f32 %v177_v26 }
 0x12f   :  { %568 = vtanh.f32 %v180_v29 }
 0x137   :  { %v567_v31 = vpop.eup %566 }
 0x139   :  { %v569_v32 = vpop.eup %568 }
 0x13a   :  { %v185_v33 = vpack.c.bf16 %v569_v32, %v567_v31 }
 0x13c   :  { %512 = vmatmul.mubr.bf16.vlgmr.msra.gmra.mrb[0].mxu1 %v185_v33 }
 0x20f   :  { %v291_v39 = vpop.f32.mrb[0].mxu1 }
 0x210   :  { %v292_v40 = vadd.f32 %v430_v38, %v291_v39  ;;  %v513_v41 = vpop.f32.mrb[1].mxu1 }
 0x211   :  { %v294_v42 = vpop.f32.mrb[2].mxu1 }
 0x212   :  { %v295_v43 = vadd.f32 %v430_v38, %v294_v42  ;;  %v514_v44 = vpop.f32.mrb[3].mxu1  ;;  %570 = vtanh.f32 %v292_v40 }
 0x214   :  { %572 = vtanh.f32 %v295_v43 }
 0x21c   :  { %v571_v45 = vpop.eup %570 }
 0x21e   :  { %v573_v46 = vpop.eup %572 }
 0x21f   :  { %v300_v47 = vpack.c.bf16 %v573_v46, %v571_v45 }
 0x221   :  { %532 = vmatmul.mubr.bf16.vlgmr.msra.gmra.mrb[4].mxu0 %v300_v47 }
 0x2f4   :  { %v406_v49 = vpop.f32.mrb[4].mxu0 }
 0x2f5   :  { %v407_v50 = vadd.f32 %v439_v48, %v406_v49  ;;  %v533_v51 = vpop.f32.mrb[5].mxu0 }
 0x2f6   :  { %v409_v52 = vpop.f32.mrb[6].mxu0 }
 0x2f7   :  { %413 = vst [vmem:[%s801_s7] sm:$0xff] %v407_v50  ;;  %v410_v53 = vadd.f32 %v439_v48, %v409_v52  ;;  %v534_v54 = vpop.f32.mrb[7].mxu0 }
 0x2f9   :  { %414 = vst [vmem:[%s801_s7 + $0x8] sm:$0xff] %v410_v53 }
 0x2fa   :  { %419 = vsyncpa [#allocation3], 1 }
 0x2fb   :  { %420 = vsyncpa [#allocation5], 1 }

</bundles_post_ra>
